<compile_context>
chip_gen: v6e
topology: v6e:2x2x1
jax: 0.10.0
libtpu: 0.0.40
codegen_flags: <defaults>
</compile_context>

<pallas_src>
import math

import numpy as np
import jax
import jax.numpy as jnp
from jax.experimental import pallas as pl
from jax.experimental.pallas import tpu as pltpu


# ----------------------------------------------------------------------------
# Per-generation VMEM budget + tiling
# ----------------------------------------------------------------------------
def _vmem_budget():
    """(block working-set budget, vmem_limit_bytes) derived from the chip."""
    phys = 64 << 20                       # conservative fallback (v7x per-TC VMEM)
    try:
        info = pltpu.get_tpu_info()
        cap = getattr(info, "vmem_capacity_bytes", None)
        if cap:
            phys = int(cap)
    except Exception:
        pass
    ws_budget = min(phys // 4, 24 << 20)              # double-buffered block bytes
    vmem_limit = max(32 << 20, min(phys // 2, ws_budget + (16 << 20)))
    return ws_budget, vmem_limit


def _pick_tiles(BA, HW, per_elem_bytes, ws_budget):
    """Pick exact-divisor (ba_tile, hw_tile).

    Prefers >= 2 total grid blocks (so v7x's two TensorCores both get work via
    the 'parallel' grid), then the largest tile area that fits the working-set
    budget (fewer grid steps, bigger DMAs on v5e/v6e)."""
    def _divs(n, step):
        d = [v for v in range(step, n + 1, step) if n % v == 0]
        return d if d else [n]               # fall back to the full dim

    cands = []
    for tb in _divs(BA, 8):
        for th in _divs(HW, 128):
            cands.append((tb, th, (BA // tb) * (HW // th),
                          per_elem_bytes * tb * th))
    fitting = [c for c in cands if c[3] <= ws_budget]
    pool = fitting if fitting else [min(cands, key=lambda c: c[3])]
    multi = [c for c in pool if c[2] >= 2]
    pool = multi if multi else pool
    tb, th, _, _ = max(pool, key=lambda c: c[0] * c[1])
    return tb, th


# ----------------------------------------------------------------------------
# Kernel 1: decode box logits -> [cx, cy, pw, ph]
# ----------------------------------------------------------------------------
def _decode_boxes_kernel(pred_ref, gconst_ref, anchor_ref, out_ref):
    # pred_ref:   (4, tb, th) raw logits (x, y, w, h)
    # gconst_ref: (2, 1, th)  grid_x / grid_y rows (broadcast over sublanes)
    # anchor_ref: (2, tb, 1)  anchor_w / anchor_h  (broadcast over lanes)
    # out_ref:    (4, tb, th) [cx, cy, pw, ph]
    out_ref[0] = jax.nn.sigmoid(pred_ref[0]) + gconst_ref[0]
    out_ref[1] = jax.nn.sigmoid(pred_ref[1]) + gconst_ref[1]
    out_ref[2] = jnp.exp(pred_ref[2]) * anchor_ref[0]
    out_ref[3] = jnp.exp(pred_ref[3]) * anchor_ref[1]


def _decode_boxes(pred_box, gconst, anchor, tb, th, vmem_limit):
    _, BA, HW = pred_box.shape
    nb, nh = BA // tb, HW // th
    return pl.pallas_call(
        _decode_boxes_kernel,
        out_shape=jax.ShapeDtypeStruct((4, BA, HW), jnp.float32),
        grid=(nb, nh),
        in_specs=[
            pl.BlockSpec((4, tb, th), lambda i, j: (0, i, j)),
            pl.BlockSpec((2, 1, th), lambda i, j: (0, 0, j)),
            pl.BlockSpec((2, tb, 1), lambda i, j: (0, i, 0)),
        ],
        out_specs=pl.BlockSpec((4, tb, th), lambda i, j: (0, i, j)),
        compiler_params=pltpu.CompilerParams(
            dimension_semantics=("parallel", "parallel"),
            vmem_limit_bytes=vmem_limit),
        cost_estimate=pl.CostEstimate(
            flops=4 * BA * HW,
            transcendentals=4 * BA * HW,
            bytes_accessed=32 * BA * HW),
    )(pred_box, gconst, anchor)


# ----------------------------------------------------------------------------
# Kernel 2: dense conf term  --  sum over ALL cells of min(softplus(zc), 100)
# (the only full-grid loss term; everything mask-gated is handled sparsely)
# ----------------------------------------------------------------------------
def _noobj_conf_kernel(conf_ref, out_ref):
    # conf_ref: (tb, th) raw conf logits
    # out_ref:  (1, 1, th) lane-dense per-block partial sums (sublane-reduced)
    zc = conf_ref[...]
    s = jnp.log(1.0 + jnp.exp(-jnp.abs(zc)))       # shared softplus tail (1 exp, 1 log)
    sp = jnp.maximum(zc, 0.0) + s                  # softplus(zc) = -log(1 - sigmoid(zc))
    sp = jnp.minimum(sp, 100.0)                    # PyTorch BCE's log clamp at -100
    out_ref[0] = jnp.sum(sp, axis=0, keepdims=True)


def _noobj_conf_partials(conf_logit, tb, th, vmem_limit):
    BA, HW = conf_logit.shape
    nb, nh = BA // tb, HW // th
    return pl.pallas_call(
        _noobj_conf_kernel,
        out_shape=jax.ShapeDtypeStruct((nb, 1, HW), jnp.float32),
        grid=(nb, nh),
        in_specs=[pl.BlockSpec((tb, th), lambda i, j: (i, j))],
        out_specs=pl.BlockSpec((1, 1, th), lambda i, j: (i, 0, j)),
        compiler_params=pltpu.CompilerParams(
            dimension_semantics=("parallel", "parallel"),
            vmem_limit_bytes=vmem_limit),
        cost_estimate=pl.CostEstimate(
            flops=6 * BA * HW,
            transcendentals=2 * BA * HW,
            bytes_accessed=4 * BA * HW + 4 * nb * HW),
    )(conf_logit)


# ----------------------------------------------------------------------------
# Tiny jnp helpers for the sparse (positive-cell) terms
# ----------------------------------------------------------------------------
def _bce_from_logits(z, t):
    # BCE(sigmoid(z), t) with PyTorch's -100 log clamp, from the logit.
    s = jnp.log(1.0 + jnp.exp(-jnp.abs(z)))
    logp = jnp.maximum(jnp.minimum(z, 0.0) - s, -100.0)
    log1mp = jnp.maximum(jnp.minimum(-z, 0.0) - s, -100.0)
    return -(t * logp + (1.0 - t) * log1mp)


def _softplus_clamped(z):
    s = jnp.log(1.0 + jnp.exp(-jnp.abs(z)))
    return jnp.minimum(jnp.maximum(z, 0.0) + s, 100.0)


def _smooth_l1(p, t):
    d = jnp.abs(p - t)
    return jnp.where(d < 1.0, 0.5 * d * d, d - 0.5)


# ----------------------------------------------------------------------------
# Host-side helpers (glue, faithful to the PyTorch reference)
# ----------------------------------------------------------------------------
def _bbox_iou_xywh(box1, box2):
    # boxes: [cx, cy, w, h]; box1 (1,4) broadcast against box2 (N,4) -> (N,)
    b1x1 = box1[:, 0] - box1[:, 2] / 2.0
    b1x2 = box1[:, 0] + box1[:, 2] / 2.0
    b1y1 = box1[:, 1] - box1[:, 3] / 2.0
    b1y2 = box1[:, 1] + box1[:, 3] / 2.0
    b2x1 = box2[:, 0] - box2[:, 2] / 2.0
    b2x2 = box2[:, 0] + box2[:, 2] / 2.0
    b2y1 = box2[:, 1] - box2[:, 3] / 2.0
    b2y2 = box2[:, 1] + box2[:, 3] / 2.0
    inter_w = np.clip(np.minimum(b1x2, b2x2) - np.maximum(b1x1, b2x1), 0.0, None)
    inter_h = np.clip(np.minimum(b1y2, b2y2) - np.maximum(b1y1, b2y1), 0.0, None)
    inter = inter_w * inter_h
    area1 = (b1x2 - b1x1) * (b1y2 - b1y1)
    area2 = (b2x2 - b2x1) * (b2y2 - b2y1)
    return inter / (area1 + area2 - inter + 1e-16)


class LVnetLossPallas:
    def __init__(self, anchors, num_classes, stride, config):
        config_anchor = config['model']['anchors']
        self.anchors = list(anchors)
        self.total_anchors = [a for scale in config_anchor for a in scale]
        self.anchors_mask = [self.total_anchors.index(a) for a in self.anchors]
        self.num_anchors = len(self.anchors)
        self.num_classes = num_classes
        self.bbox_attrs = 4 + num_classes
        self.stride = stride
        self.ignore_threshold = 0.5
        self.lambda_xy = 2.5
        self.lambda_wh = 2.5
        self.lambda_conf = 1.0
        self.lambda_cls = 1.0
        self.config = config
        self.scaled_anchors = [(aw / stride, ah / stride) for aw, ah in self.anchors]
        self.scaled_total_anchors = [(aw / stride, ah / stride)
                                     for aw, ah in self.total_anchors]
        self._const_cache = {}   # (bs, in_h, in_w) -> (gconst, anchor) device arrays
        self._ws_budget, self._vmem_limit = _vmem_budget()

    # ---- cached device constants (grid offsets, per-row anchors) ------------
    def _get_consts(self, bs, in_h, in_w):
        key = (bs, in_h, in_w)
        cached = self._const_cache.get(key)
        if cached is None:
            HW = in_h * in_w
            gx = np.tile(np.arange(in_w, dtype=np.float32), in_h)
            gy = np.repeat(np.arange(in_h, dtype=np.float32), in_w)
            gconst = jnp.asarray(np.stack([gx, gy])[:, None, :])       # (2, 1, HW)
            sa = np.asarray(self.scaled_anchors, np.float32)           # (A, 2)
            awh = np.tile(sa.T[:, None, :], (1, bs, 1))                # (2, bs, A)
            anchor = jnp.asarray(
                awh.reshape(2, bs * self.num_anchors, 1))              # (2, BA, 1)
            cached = (gconst, anchor)
            self._const_cache[key] = cached
        return cached

    # ---- host-side target assignment (data-dependent scalar scatter) -------
    def get_target(self, target, scaled_anchors, in_w, in_h, pred_boxs,
                   scaled_total_anchors):
        n_obj = 0
        bs = target.shape[0]
        A = self.num_anchors
        shape = (bs, A, in_h, in_w)
        mask = np.zeros(shape, np.float32)
        scales = np.zeros(shape, np.float32)
        noobj_mask = np.ones(shape, np.float32)
        tx = np.zeros(shape, np.float32)
        ty = np.zeros(shape, np.float32)
        tw = np.zeros(shape, np.float32)
        th = np.zeros(shape, np.float32)
        tconf = np.zeros(shape, np.float32)
        giou_gt_box = np.zeros(shape + (4,), np.float32)

        anchor_shapes = np.concatenate(
            (np.zeros((len(scaled_total_anchors), 2), np.float32),
             np.array(scaled_total_anchors, np.float32)), axis=1)

        for b in range(bs):
            pred_box = pred_boxs[b].reshape(-1, 4)
            for t in range(target.shape[1]):
                if float(target[b, t].sum()) == 0.0:
                    continue
                n_obj += 1
                gx = float(target[b, t, 1]) * in_w
                gy = float(target[b, t, 2]) * in_h
                gw = float(target[b, t, 3]) * in_w
                gh = float(target[b, t, 4]) * in_h
                gi = int(gx)
                gj = int(gy)
                gt_box = np.array([[0.0, 0.0, gw, gh]], np.float32)
                anchor_match_ious = _bbox_iou_xywh(gt_box, anchor_shapes)
                gt_box[0, 0] = gx
                gt_box[0, 1] = gy
                pred_ious = _bbox_iou_xywh(gt_box, pred_box).reshape(A, in_h, in_w)
                noobj_mask[b][pred_ious >= self.ignore_threshold] = 0
                best_n = int(np.argmax(anchor_match_ious))
                if best_n in self.anchors_mask:
                    anchor_index = self.anchors.index(self.total_anchors[best_n])
                    mask[b, anchor_index, gj, gi] = 1
                    noobj_mask[b, anchor_index, gj, gi] = 0
                    tconf[b, anchor_index, gj, gi] = 1
                    # Reference never updates match_max_IOU, so the gating
                    # condition is always False -> always write the targets.
                    scales[b, anchor_index, gj, gi] = \
                        2.0 - float(target[b, t, 3]) * float(target[b, t, 4])
                    tx[b, anchor_index, gj, gi] = gx - gi
                    ty[b, anchor_index, gj, gi] = gy - gj
                    tw[b, anchor_index, gj, gi] = math.log(
                        gw / scaled_anchors[anchor_index][0] + 1e-16)
                    th[b, anchor_index, gj, gi] = math.log(
                        gh / scaled_anchors[anchor_index][1] + 1e-16)
                    giou_gt_box[b, anchor_index, gj, gi] = gt_box[0]
        return (n_obj, mask, noobj_mask, tx, ty, tw, th, tconf, scales,
                giou_gt_box)

    # ---- forward ------------------------------------------------------------
    def forward(self, input, targets=None):
        input = jnp.asarray(input, jnp.float32)
        bs, _, in_h, in_w = input.shape
        A = self.num_anchors
        attrs = self.bbox_attrs
        HW = in_h * in_w
        BA = bs * A

        # NCHW -> attribute-major logits; only planes 0..4 are ever needed
        # (loss_cls is hard-coded to 0 in the reference's non-GIOU branch).
        p = input.reshape(bs, A, attrs, HW)                         # (bs, A, attrs, HW)
        pred_box_logits = jnp.transpose(p[:, :, :4], (2, 0, 1, 3)) \
                             .reshape(4, BA, HW)                    # (4, BA, HW)
        conf_logit = p[:, :, 4].reshape(BA, HW)                     # (BA, HW)

        gconst, anchor = self._get_consts(bs, in_h, in_w)
        # decode working set: (4 in + 4 out) f32 planes, double-buffered
        ba_tile, hw_tile = _pick_tiles(BA, HW, 64, self._ws_budget)

        boxes = _decode_boxes(pred_box_logits, gconst, anchor,
                              ba_tile, hw_tile, self._vmem_limit)   # (4, BA, HW)

        if targets is not None:
            if self.config.get('GIOU', False):
                # TODO(synk): GIOU branch requires the external GIOU class; only
                # the non-GIOU (BCE/SmoothL1) branch is implemented.
                raise NotImplementedError("GIOU branch not implemented")

            # single device->host fetch of decoded boxes for target assignment
            pbox_np = np.asarray(boxes)                             # (4, BA, HW)
            pred_boxes_np = np.transpose(pbox_np, (1, 2, 0)) \
                              .reshape(bs, A, in_h, in_w, 4)

            (all_n_obj, mask, noobj_mask, tx, ty, tw, th, _tconf,
             coord_scale, _giou_gt) = self.get_target(
                np.asarray(targets), self.scaled_anchors, in_w, in_h,
                pred_boxes_np, self.scaled_total_anchors)

            layer_n_obj = int((mask == 1).sum())
            if layer_n_obj == 0:
                return (jnp.zeros((), jnp.float32), 0.0, 0.0, 0.0, 0.0, 0.0, 0.0)

            # ---- sparse path: terms gated by mask / coord_scale are nonzero
            # only at the positive cells whose indices the host just computed.
            pos_idx = np.flatnonzero(mask.reshape(-1)).astype(np.int32)
            zero_idx = np.flatnonzero(noobj_mask.reshape(-1) == 0).astype(np.int32)

            pos_d = jnp.asarray(pos_idx)
            zero_d = jnp.asarray(zero_idx)
            box_logits_p = jnp.take(pred_box_logits.reshape(4, BA * HW),
                                    pos_d, axis=1)                  # (4, P)
            zc_flat = conf_logit.reshape(BA * HW)
            zc_pos = jnp.take(zc_flat, pos_d)
            zc_zero = jnp.take(zc_flat, zero_d)

            cs_p = jnp.asarray(coord_scale.reshape(-1)[pos_idx])
            tx_p = jnp.asarray(tx.reshape(-1)[pos_idx])
            ty_p = jnp.asarray(ty.reshape(-1)[pos_idx])
            tw_p = jnp.asarray(tw.reshape(-1)[pos_idx])
            th_p = jnp.asarray(th.reshape(-1)[pos_idx])

            # ---- dense path: 0.5*BCE(conf*noobj, 0) = sum over noobj cells of
            # min(softplus(zc),100).  Compute the sum over ALL cells with the
            # Pallas kernel (reads ONE f32 plane) and subtract the cells where
            # noobj == 0 (there the reference term is exactly 0).
            partials = _noobj_conf_partials(conf_logit, ba_tile, hw_tile,
                                            self._vmem_limit)       # (nblk,1,HW)
            dense_sum = jnp.sum(partials)

            sum_x = jnp.sum(cs_p * _bce_from_logits(box_logits_p[0], tx_p))
            sum_y = jnp.sum(cs_p * _bce_from_logits(box_logits_p[1], ty_p))
            sum_w = jnp.sum(cs_p * _smooth_l1(box_logits_p[2], tw_p))
            sum_h = jnp.sum(cs_p * _smooth_l1(box_logits_p[3], th_p))
            sum_conf_pos = jnp.sum(_softplus_clamped(-zc_pos))      # BCE(conf,1) @ mask
            sum_conf_noobj = dense_sum - jnp.sum(_softplus_clamped(zc_zero))

            n = jnp.float32(all_n_obj)
            loss_x = sum_x / n
            loss_y = sum_y / n
            loss_w = sum_w / n
            loss_h = sum_h / n
            loss_conf = sum_conf_pos / n + 0.5 * sum_conf_noobj / n
            loss_cls = 0.0   # reference hard-codes loss_cls = 0 (non-GIOU branch)
            loss = (self.lambda_xy * (loss_x + loss_y)
                    + self.lambda_wh * (loss_w + loss_h)
                    + self.lambda_conf * loss_conf
                    + self.lambda_cls * loss_cls)

            results = jnp.stack([loss, loss_x, loss_y, loss_w, loss_h, loss_conf])
            vals = np.asarray(results)                   # ONE device->host sync
            return (results[0], float(vals[1]), float(vals[2]), float(vals[3]),
                    float(vals[4]), float(vals[5]), float(loss_cls))
        else:
            # inference decode: (bs, A*H*W, 4 + 1 + num_classes)
            boxes_o = jnp.transpose(boxes, (1, 2, 0)).reshape(bs, A * HW, 4) \
                      * jnp.float32(self.stride)
            conf_o = jax.nn.sigmoid(conf_logit).reshape(bs, A * HW, 1)
            cls_o = jnp.ones((bs, A * HW, self.num_classes), jnp.float32)
            return jnp.concatenate([boxes_o, conf_o, cls_o], axis=-1)


# ----------------------------------------------------------------------------
if __name__ == "__main__":
    key = jax.random.PRNGKey(0)

    bs, H, W, stride = 2, 16, 16, 8
    num_classes = 2
    config = {
        'model': {'anchors': [[(10, 13), (16, 30)], [(33, 23), (30, 61)]]},
        'GIOU': False,
    }
    anchors = [(10, 13), (16, 30)]          # this layer owns scale 0
    num_anchors = len(anchors)
    bbox_attrs = 4 + num_classes            # 6
    C = num_anchors * bbox_attrs            # 12

    x_in = jax.random.normal(key, (bs, C, H, W), dtype=jnp.float32)

    # deterministic targets: (bs, max_objs, 5) = [cls, cx, cy, w, h] (normalized)
    targets = np.array(
        [[[0.0, 0.50, 0.50, 0.30, 0.40],
          [1.0, 0.20, 0.30, 0.10, 0.20],
          [0.0, 0.00, 0.00, 0.00, 0.00]],
         [[0.0, 0.70, 0.60, 0.25, 0.15],
          [0.0, 0.00, 0.00, 0.00, 0.00],
          [0.0, 0.00, 0.00, 0.00, 0.00]]], dtype=np.float32)

    loss_mod = LVnetLossPallas(anchors, num_classes, stride, config)

    # training path (loss)
    out = loss_mod.forward(x_in, targets)
    loss = jax.block_until_ready(out[0])
    assert np.isfinite(float(loss)), "loss is not finite"

    # inference path (decode)
    dec = loss_mod.forward(x_in, None)
    dec = jax.block_until_ready(dec)
    assert dec.shape == (bs, num_anchors * H * W, 4 + 1 + num_classes)

    print("KERNEL_OK")
</pallas_src>

<mosaic_0001>
module attributes {stable_mosaic.version = 11 : i64} {
  func.func @_decode_boxes_kernel(%arg0: i32, %arg1: i32, %arg2: memref<4x4x128xf32, #tpu.memory_space<vmem>>, %arg3: memref<2x1x128xf32, #tpu.memory_space<vmem>>, %arg4: memref<2x4x1xf32, #tpu.memory_space<vmem>>, %arg5: memref<4x4x128xf32, #tpu.memory_space<vmem>>) attributes {dimension_semantics = [#tpu.dimension_semantics<parallel>, #tpu.dimension_semantics<parallel>], iteration_bounds = array<i64: 1, 2>, scalar_prefetch = 0 : i64, scratch_operands = 0 : i64, tpu.core_type = #tpu.core_type<tc>, window_params = [{transform_indices = @transform_0, window_bounds = array<i64: 4, 4, 128>}, {transform_indices = @transform_1, window_bounds = array<i64: 2, 1, 128>}, {transform_indices = @transform_2, window_bounds = array<i64: 2, 4, 1>}, {transform_indices = @transform_3, window_bounds = array<i64: 4, 4, 128>}]} {
    %c0 = arith.constant 0 : index
    %c0_0 = arith.constant 0 : index
    %c0_1 = arith.constant 0 : index
    %0 = vector.load %arg2[%c0, %c0_0, %c0_1] : memref<4x4x128xf32, #tpu.memory_space<vmem>>, vector<1x4x128xf32>
    %1 = vector.shape_cast %0 : vector<1x4x128xf32> to vector<4x128xf32>
    %2 = arith.negf %1 : vector<4x128xf32>
    %3 = math.exp %2 : vector<4x128xf32>
    %cst = arith.constant 1.000000e+00 : f32
    %4 = vector.broadcast %cst : f32 to vector<4x128xf32>
    %5 = arith.addf %4, %3 : vector<4x128xf32>
    %6 = arith.divf %4, %5 : vector<4x128xf32>
    %c0_2 = arith.constant 0 : index
    %c0_3 = arith.constant 0 : index
    %c0_4 = arith.constant 0 : index
    %7 = vector.load %arg3[%c0_2, %c0_3, %c0_4] : memref<2x1x128xf32, #tpu.memory_space<vmem>>, vector<1x1x128xf32>
    %8 = vector.shape_cast %7 : vector<1x1x128xf32> to vector<1x128xf32>
    %9 = vector.broadcast %8 : vector<1x128xf32> to vector<4x128xf32>
    %10 = arith.addf %6, %9 : vector<4x128xf32>
    %c0_5 = arith.constant 0 : index
    %c0_6 = arith.constant 0 : index
    %c0_7 = arith.constant 0 : index
    %11 = vector.load %arg5[%c0_5, %c0_6, %c0_7] : memref<4x4x128xf32, #tpu.memory_space<vmem>>, vector<1x4x128xf32>
    %12 = vector.shape_cast %11 : vector<1x4x128xf32> to vector<4x128xf32>
    %13 = vector.shape_cast %10 : vector<4x128xf32> to vector<1x4x128xf32>
    tpu.vector_store %arg5[%c0_5, %c0_6, %c0_7], %13 {strides = array<i32>} : memref<4x4x128xf32, #tpu.memory_space<vmem>>, vector<1x4x128xf32>,
    %c1 = arith.constant 1 : index
    %c0_8 = arith.constant 0 : index
    %c0_9 = arith.constant 0 : index
    %14 = vector.load %arg2[%c1, %c0_8, %c0_9] : memref<4x4x128xf32, #tpu.memory_space<vmem>>, vector<1x4x128xf32>
    %15 = vector.shape_cast %14 : vector<1x4x128xf32> to vector<4x128xf32>
    %16 = arith.negf %15 : vector<4x128xf32>
    %17 = math.exp %16 : vector<4x128xf32>
    %cst_10 = arith.constant 1.000000e+00 : f32
    %18 = vector.broadcast %cst_10 : f32 to vector<4x128xf32>
    %19 = arith.addf %18, %17 : vector<4x128xf32>
    %20 = arith.divf %18, %19 : vector<4x128xf32>
    %c1_11 = arith.constant 1 : index
    %c0_12 = arith.constant 0 : index
    %c0_13 = arith.constant 0 : index
    %21 = vector.load %arg3[%c1_11, %c0_12, %c0_13] : memref<2x1x128xf32, #tpu.memory_space<vmem>>, vector<1x1x128xf32>
    %22 = vector.shape_cast %21 : vector<1x1x128xf32> to vector<1x128xf32>
    %23 = vector.broadcast %22 : vector<1x128xf32> to vector<4x128xf32>
    %24 = arith.addf %20, %23 : vector<4x128xf32>
    %c1_14 = arith.constant 1 : index
    %c0_15 = arith.constant 0 : index
    %c0_16 = arith.constant 0 : index
    %25 = vector.load %arg5[%c1_14, %c0_15, %c0_16] : memref<4x4x128xf32, #tpu.memory_space<vmem>>, vector<1x4x128xf32>
    %26 = vector.shape_cast %25 : vector<1x4x128xf32> to vector<4x128xf32>
    %27 = vector.shape_cast %24 : vector<4x128xf32> to vector<1x4x128xf32>
    tpu.vector_store %arg5[%c1_14, %c0_15, %c0_16], %27 {strides = array<i32>} : memref<4x4x128xf32, #tpu.memory_space<vmem>>, vector<1x4x128xf32>,
    %c2 = arith.constant 2 : index
    %c0_17 = arith.constant 0 : index
    %c0_18 = arith.constant 0 : index
    %28 = vector.load %arg2[%c2, %c0_17, %c0_18] : memref<4x4x128xf32, #tpu.memory_space<vmem>>, vector<1x4x128xf32>
    %29 = vector.shape_cast %28 : vector<1x4x128xf32> to vector<4x128xf32>
    %30 = math.exp %29 : vector<4x128xf32>
    %c0_19 = arith.constant 0 : index
    %c0_20 = arith.constant 0 : index
    %c0_21 = arith.constant 0 : index
    %31 = vector.load %arg4[%c0_19, %c0_20, %c0_21] : memref<2x4x1xf32, #tpu.memory_space<vmem>>, vector<1x4x1xf32>
    %32 = vector.shape_cast %31 : vector<1x4x1xf32> to vector<4x1xf32>
    %33 = vector.broadcast %32 : vector<4x1xf32> to vector<4x128xf32>
    %34 = arith.mulf %30, %33 : vector<4x128xf32>
    %c2_22 = arith.constant 2 : index
    %c0_23 = arith.constant 0 : index
    %c0_24 = arith.constant 0 : index
    %35 = vector.load %arg5[%c2_22, %c0_23, %c0_24] : memref<4x4x128xf32, #tpu.memory_space<vmem>>, vector<1x4x128xf32>
    %36 = vector.shape_cast %35 : vector<1x4x128xf32> to vector<4x128xf32>
    %37 = vector.shape_cast %34 : vector<4x128xf32> to vector<1x4x128xf32>
    tpu.vector_store %arg5[%c2_22, %c0_23, %c0_24], %37 {strides = array<i32>} : memref<4x4x128xf32, #tpu.memory_space<vmem>>, vector<1x4x128xf32>,
    %c3 = arith.constant 3 : index
    %c0_25 = arith.constant 0 : index
    %c0_26 = arith.constant 0 : index
    %38 = vector.load %arg2[%c3, %c0_25, %c0_26] : memref<4x4x128xf32, #tpu.memory_space<vmem>>, vector<1x4x128xf32>
    %39 = vector.shape_cast %38 : vector<1x4x128xf32> to vector<4x128xf32>
    %40 = math.exp %39 : vector<4x128xf32>
    %c1_27 = arith.constant 1 : index
    %c0_28 = arith.constant 0 : index
    %c0_29 = arith.constant 0 : index
    %41 = vector.load %arg4[%c1_27, %c0_28, %c0_29] : memref<2x4x1xf32, #tpu.memory_space<vmem>>, vector<1x4x1xf32>
    %42 = vector.shape_cast %41 : vector<1x4x1xf32> to vector<4x1xf32>
    %43 = vector.broadcast %42 : vector<4x1xf32> to vector<4x128xf32>
    %44 = arith.mulf %40, %43 : vector<4x128xf32>
    %c3_30 = arith.constant 3 : index
    %c0_31 = arith.constant 0 : index
    %c0_32 = arith.constant 0 : index
    %45 = vector.load %arg5[%c3_30, %c0_31, %c0_32] : memref<4x4x128xf32, #tpu.memory_space<vmem>>, vector<1x4x128xf32>
    %46 = vector.shape_cast %45 : vector<1x4x128xf32> to vector<4x128xf32>
    %47 = vector.shape_cast %44 : vector<4x128xf32> to vector<1x4x128xf32>
    tpu.vector_store %arg5[%c3_30, %c0_31, %c0_32], %47 {strides = array<i32>} : memref<4x4x128xf32, #tpu.memory_space<vmem>>, vector<1x4x128xf32>,
    return
  }
  func.func @transform_0(%arg0: i32, %arg1: i32) -> (i32, i32, i32) {
    %c0_i32 = arith.constant 0 : i32
    %c0_i32_0 = arith.constant 0 : i32
    return %c0_i32, %arg0, %arg1 : i32, i32, i32
  }
  func.func @transform_1(%arg0: i32, %arg1: i32) -> (i32, i32, i32) {
    %c0_i32 = arith.constant 0 : i32
    %c0_i32_0 = arith.constant 0 : i32
    %c0_i32_1 = arith.constant 0 : i32
    return %c0_i32, %c0_i32_0, %arg1 : i32, i32, i32
  }
  func.func @transform_2(%arg0: i32, %arg1: i32) -> (i32, i32, i32) {
    %c0_i32 = arith.constant 0 : i32
    %c0_i32_0 = arith.constant 0 : i32
    %c0_i32_1 = arith.constant 0 : i32
    return %c0_i32, %arg0, %c0_i32_0 : i32, i32, i32
  }
  func.func @transform_3(%arg0: i32, %arg1: i32) -> (i32, i32, i32) {
    %c0_i32 = arith.constant 0 : i32
    %c0_i32_0 = arith.constant 0 : i32
    return %c0_i32, %arg0, %arg1 : i32, i32, i32
  }
}

</mosaic_0001>

<bundles_post_ra>
// kernel: tpu_custom_call.1
= control target key start
LH: loop header
LB: loop body
LE: loop exit
PB: predicated region body
PF: predicated region fallthrough
CT: control target
= control target key end

     0   :  { %8 = vsyncpa [#allocation3], 0  ;;  %s884_s0 = inlined_call_operand.hbm [shape: f32[4,4,256], index: 0, kind: input, shape index: {}]   ;;  %s885_s1 = inlined_call_operand.vmem [shape: f32[2,1,256], index: 1, kind: input, shape index: {}]   ;;  %s886_s2 = inlined_call_operand.vmem [shape: f32[2,4,1], index: 2, kind: input, shape index: {}]   ;;  %s887_s3 = inlined_call_operand.hbm [shape: f32[4,4,256], index: 3, kind: output, shape index: {}]  }
   0x1   :  { %10 = vsyncpa [#allocation3 + $0x1], 0 }
   0x2   :  { %11 = vsyncpa [#allocation4], 0 }
   0x3   :  { %13 = vsyncpa [#allocation4 + $0x1], 0  ;;  %s717_s12 = smov 0   ;;  %s719_s13 = smov 0  }
   0x4   :  { %s721_s14 = smov 0   ;;  %s723_s15 = smov 0  }
   0x5   :  { %s725_s16 = smov 0   ;;  %s727_s17 = smov 0  }
   0x6 LB: > { %s475_s18 = sadd.s32 4294967295, %s686_s17   ;;  %s476_s19 = sadd.s32 4294967294, %s686_s17   ;;  %s686_s17 = sphi %s727_s17, %s19_s17   ;;  %s682_s16 = sphi %s725_s16, %s896_s16   ;;  %s678_s15 = sphi %s723_s15, %s895_s15   ;;  %s674_s14 = sphi %s721_s14, %s894_s14   ;;  %s670_s13 = sphi %s719_s13, %s893_s13   ;;  %s666_s12 = sphi %s717_s12, %s892_s12  }
   0x7   : > { %s28_s20 = sadd.s32 1, %s682_s16  ;;  %s40_s21 = sadd.s32 1, %s674_s14 }
   0x8   : > { %p29_p0 = scmp.ge.s32.totalorder %s28_s20, 2  ;;  %p47_p1 = scmp.ne.s32.totalorder %s674_s14, %s670_s13 }
   0x9   : > { %p48_p2 = scmp.eq.s32.totalorder %s686_s17, 0  ;;  %p53_p3 = scmp.ne.s32.totalorder %s670_s13, %s666_s12 }
   0xa   : > { %s898_s20 = smov (%p29_p0, %s28_s20), 0  ;;  %p54_p5 = scmp.eq.s32.totalorder %s475_s18, 0 }
   0xb   : > { %p758_p4 = por %p48_p2, %p47_p1  ;;  %s36_s23 = ssub.s32 %s682_s16, %s898_s20 }
   0xc   : > { %p131_p6 = scmp.eq.s32.totalorder %s475_s18, 1  ;;  %p38_p7 = scmp.eq.s32.totalorder %s36_s23, 0 }
   0xd   : > { %p764_p8 = por %p54_p5, %p53_p3  ;;  %p137_p10 = scmp.eq.s32.totalorder %s476_s19, 1 }
   0xe   : > { %p768_p9 = por %p131_p6, %p47_p1  ;;  %p479_p12 = scmp.ge.s32.totalorder %s686_s17, 2 }
   0xf   : > { %s773_s26 = scalar_select %p38_p7, %s674_s14, %s40_s21  }
  0x10   : > { %p775_p11 = por %p137_p10, %p53_p3  ;;  %160 = sbr.rel (%p479_p12) target bundleno = 37 (0x25), region = 20 }
  0x11   : > { %s783_s28 = sand.u32 (!%p479_p12), 1, %s674_s14   ;;  %s481_s29 = sshll.u32 (!%p479_p12), %s682_s16, 6 }
  0x12   : > { %s480_s30 = sshll.u32 (!%p479_p12), %s783_s28, 4  ;;  %s175_s6 = scalar_lea.hbm (!%p479_p12), %s884_s0, %s481_s29 }
  0x13   : > { %s168_s7 = scalar_lea.vmem (!%p479_p12), [#allocation2], %s480_s30  ;;  %s165_s9 = scalar_lea.sflag (!%p479_p12), [#allocation3], %s783_s28 }
  0x14   : > { %s176_s8 = sshll.u32 (!%p479_p12), %s168_s7, 4  ;;  %s688_s11 = smov (!%p479_p12), [#allocation2]   ;;  %s177_s8 = int_to_ptr.vmem [resolvable:$true] %s176_s8 }
  0x15   : > { %s592_s10 = scalar_lea.vmem %s177_s8, 256  ;;  %s596_s18 = sshll.u32 %s688_s11, 4  ;;  %s597_s18 = int_to_ptr.vmem [resolvable:$false] %s596_s18 }
  0x16   : > { %p593_p13 = scmp.ne.s32.totalorder %s177_s8, %s592_s10  ;;  %s598_s19 = scalar_lea.vmem %s597_s18, 512 }
  0x17   : > { %p599_p2 = scmp.lt.s32.totalorder %s177_s8, %s597_s18  ;;  %p600_p3 = scmp.lt.s32.totalorder %s598_s19, %s592_s10 }
  0x18   : > { %p594_p0 = pnand %p593_p13, %p758_p4 }
  0x19   : > { %p601_p5 = por %p600_p3, %p599_p2 }
  0x1a   : > { %p595_p1 = pneg %p594_p0 }
  0x1c   : > { %p602_p6 = pnand %p601_p5, %p595_p1 }
  0x1e   : > { %605 = shalt.err (!%p602_p6)
}
  0x1f   : > { %s689_s21 = smov 128   ;;  %s690_s23 = smov 64  }
  0x20   : > { %s691_s29 = smov 4   ;;  %185 = sbr.rel (!%p758_p4) target bundleno = 37 (0x25), region = 28 }
  0x21   : > { %503 = dma.hbm_to_vmem [thread:$0]  (%p758_p4), %s175_s6, 256, %s177_s8, %s165_s9, %s689_s21, %s690_s23, %s691_s29  }
  0x22   : > { %s482_s30 = sshll.u32 (%p758_p4), %s783_s28, 1  ;;  %s190_s7 = scalar_lea.vmem (%p758_p4), %s885_s1, %s682_s16 }
  0x23   : > { %v207_v0 = vld [vmem:[%s190_s7] sm:$0x1] (%p758_p4)  ;;  %v209_v1 = vld [vmem:[%s190_s7 + $0x2] sm:$0x1] (%p758_p4)  ;;  %s189_s10 = scalar_lea.vmem (%p758_p4), [#allocation5], %s482_s30 }
  0x24   : > { %208 = vst [vmem:[%s189_s10] sm:$0x1] (%p758_p4), %v207_v0  ;;  %210 = vst [vmem:[%s189_s10 + $0x1] sm:$0x1] (%p758_p4), %v209_v1 }
  0x25 PF: > { %p483_p7 = scmp.ge.s32.totalorder %s686_s17, 1  ;;  %p229_p10 = scmp.lt.s32.totalorder %s686_s17, 3 }
  0x27   : > { %p230_p13 = pnand %p483_p7, %p229_p10 }
  0x28   : > { %s805_s22 = sand.u32 (!%p230_p13), 1, %s670_s13  }
  0x29   : > { %233 = sbr.rel (%p230_p13) target bundleno = 194 (0xc2), region = 62  ;;  %s484_s28 = sshll.u32 (!%p230_p13), %s805_s22, 4 }
  0x2a   : > { %s236_s6 = scalar_lea.sflag (!%p230_p13), [#allocation3], %s805_s22  ;;  %s811_s8 = scalar_lea.vmem (!%p230_p13), [#allocation2], %s484_s28 }
  0x2e   : > { %657 = dma.done.wait (%p764_p8), %s236_s6, 256  }
  0x2f   : > { %659 = vsyncadd (%p764_p8), %s236_s6, 4294967040  ;;  %v692_v2 = vmov 0   ;;  %v320_v3 = vld [vmem:[%s886_s2] sm:$0xf]  ;;  %v489_v6 = vld [vmem:[%s811_s8 + $0x4] sm:$0xf] }
  0x30   : > { %567 = vset.pattern.permute.xlu0 %v692_v2  ;;  %v281_v4 = vld [vmem:[%s811_s8] sm:$0xf]  ;;  %v497_v7 = vld [vmem:[%s886_s2 + $0x4] sm:$0xf]  ;;  %v490_v8 = vmul.f32 -1.442695, %v489_v6 }
  0x31   : > { %323 = vperm.xlu0 %567, %v320_v3   ;;  %v487_v5 = vmul.f32 -1.442695, %v281_v4  ;;  %s485_s24 = sshll.u32 %s805_s22, 1  ;;  %s276_s23 = scalar_lea.vmem [#allocation6], %s484_s28  ;;  %v494_v19 = vld [vmem:[%s811_s8 + $0x8] sm:$0xf] }
  0x32   : > { %s247_s21 = scalar_lea.vmem [#allocation5], %s485_s24  ;;  %v318_v20 = vmul.f32 1.442695, %v494_v19  ;;  %v496_v21 = vld [vmem:[%s811_s8 + $0xc] sm:$0xf]  ;;  %s358_s29 = sshll.u32 %s276_s23, 4  ;;  %s831_s29 = int_to_ptr.vmem [resolvable:$true] %s358_s29 }
  0x33   : > { %568 = vpow2.f32 %v487_v5  ;;  %v488_v13 = vld [vmem:[%s247_s21] ss:$0 sm:$0xff]  ;;  %v492_v14 = vld [vmem:[%s247_s21 + $0x1] ss:$0 sm:$0xff]  ;;  %v331_v22 = vmul.f32 1.442695, %v496_v21 }
  0x34   : > { %570 = vpow2.f32 %v490_v8  ;;  %s500_s30 = sshll.u32 %s678_s15, 6  ;;  %s344_s10 = scalar_lea.sflag [#allocation4], %s805_s22 }
  0x35   : > { %337 = vperm.xlu0 %567, %v497_v7   ;;  %s836_s7 = scalar_lea.hbm %s887_s3, %s500_s30  ;;  %s606_s28 = scalar_lea.vmem %s831_s29, 256 }
  0x36   : > { %p607_p4 = scmp.ne.s32.totalorder %s831_s29, %s606_s28  ;;  %s693_s15 = smov [#allocation6]  }
  0x37   : > { %s610_s6 = sshll.u32 %s693_s15, 4  ;;  %s611_s6 = int_to_ptr.vmem [resolvable:$false] %s610_s6 }
  0x38   : > { %p608_p8 = pnand %p607_p4, %p768_p9  ;;  %s612_s8 = scalar_lea.vmem %s611_s6, 512 }
  0x39   : > { %p613_p1 = scmp.lt.s32.totalorder %s831_s29, %s611_s6  ;;  %p614_p2 = scmp.lt.s32.totalorder %s612_s8, %s606_s28 }
  0x3a   : > { %p609_p0 = pneg %p608_p8 }
  0x3b   : > { %p615_p3 = por %p614_p2, %p613_p1 }
  0x3d   : > { %p616_p5 = pnand %p615_p3, %p609_p0 }
  0x40   : > { %v569_v9 = vpop.eup %568 }
  0x41   : > { %v571_v10 = vpop.eup %570  ;;  %v285_v11 = vadd.f32 1.0, %v569_v9 }
  0x42   : > { %v302_v12 = vadd.f32 1.0, %v571_v10 }
  0x43   : > { %572 = vrcp.f32 %v285_v11 }
  0x44   : > { %574 = vrcp.f32 %v302_v12 }
  0x45   : > { %576 = vpow2.f32 %v318_v20 }
  0x46   : > { %578 = vpow2.f32 %v331_v22 }
  0x50   : > { %v573_v15 = vpop.eup %572 }
  0x51   : > { %v575_v16 = vpop.eup %574  ;;  %v295_v17 = vadd.f32 %v573_v15, %v488_v13 }
  0x52   : > { %v313_v18 = vadd.f32 %v575_v16, %v492_v14  ;;  %v577_v23 = vpop.eup %576 }
  0x53   : > { %296 = vst [vmem:[%s276_s23] sm:$0xf] %v295_v17  ;;  %v579_v26 = vpop.eup %578 }
  0x54   : > { %493 = vst [vmem:[%s276_s23 + $0x4] sm:$0xf] %v313_v18 }
  0xac   : > { %v324_v24 = vpop.permute.xlu0 %323 }
  0xad   : > { %v326_v25 = vmul.f32 %v577_v23, %v324_v24 }
  0xaf   : > { %495 = vst [vmem:[%s276_s23 + $0x8] sm:$0xf] %v326_v25 }
  0xb0   : > { %v338_v27 = vpop.permute.xlu0 %337 }
  0xb1   : > { %v340_v28 = vmul.f32 %v579_v26, %v338_v27 }
  0xb3   : > { %498 = vst [vmem:[%s276_s23 + $0xc] sm:$0xf] %v340_v28 }
  0xb4   : > { %619 = shalt.err (!%p616_p5)
}
  0xb5   : > { %s620_s9 = scalar_lea.hbm %s836_s7, 256  ;;  %s624_s19 = scalar_lea.hbm %s887_s3, 512 }
  0xb6   : > { %p621_p6 = scmp.ne.s32.totalorder %s836_s7, %s620_s9  ;;  %p625_p13 = scmp.lt.s32.totalorder %s836_s7, %s887_s3 }
  0xb7   : > { %p626_p4 = scmp.lt.s32.totalorder %s624_s19, %s620_s9 }
  0xb8   : > { %p622_p7 = pnand %p621_p6, %p768_p9 }
  0xb9   : > { %p627_p8 = por %p626_p4, %p625_p13 }
  0xba   : > { %p623_p10 = pneg %p622_p7 }
  0xbc   : > { %p628_p0 = pnand %p627_p8, %p623_p10 }
  0xbe   : > { %631 = shalt.err (!%p628_p0)
}
  0xbf   : > { %s694_s23 = smov 64   ;;  %s695_s30 = smov 128  }
  0xc0   : > { %s696_s4 = smov 4  }
  0xc1   : > { %505 = dma.vmem_to_hbm [thread:$0]  (%p768_p9), %s831_s29, 256, %s836_s7, %s344_s10, %s694_s23, %s695_s30, %s696_s4  }
  0xc2 PF: > { %s373_s5 = sand.u32 1, %s666_s12   ;;  %p508_p1 = pnand %p479_p12, %p775_p11 }
  0xc3   : > { %s374_s28 = scalar_lea.sflag [#allocation4], %s373_s5 }
  0xc4   : > { %p509_p2 = pneg %p508_p1 }
  0xc6   : > { %661 = dma.done.wait (%p509_p2), %s374_s28, 256  }
  0xc7   : > { %663 = vsyncadd (%p509_p2), %s374_s28, 4294967040  ;;  %s19_s17 = sadd.s32 1, %s686_s17   ;;  %s892_s12 = smov %s670_s13 }
  0xc8   : > { %p16_p3 = scmp.ge.s32.totalorder %s19_s17, 4   ;;  %s893_s13 = smov %s674_s14 }
  0xc9   : > { %s894_s14 = smov %s773_s26  ;;  %s895_s15 = smov %s682_s16 }
  0xca   : > { %s896_s16 = smov %s898_s20  ;;  %18 = sbr.rel (!%p16_p3) target bundleno = 6 (0x6), region = 130 }
  0xcf   :  { %379 = vsyncpa [#allocation3], 1 }
  0xd0   :  { %381 = vsyncpa [#allocation3 + $0x1], 1 }
  0xd1   :  { %382 = vsyncpa [#allocation4], 1 }
  0xd2   :  { %384 = vsyncpa [#allocation4 + $0x1], 1 }

</bundles_post_ra>
